<compile_context>
chip_gen: v7x
topology: tpu7x:2x2x1
jax: 0.10.0
libtpu: 0.0.40
codegen_flags: <defaults>
</compile_context>

<pallas_src>
import math

import jax
import jax.numpy as jnp
from jax.experimental import pallas as pl
from jax.experimental.pallas import tpu as pltpu


# --------------------------- kernels ---------------------------------------


def _ls_kernel_rows(a_ref, b_ref, x_ref, o_ref):
    """(B, M, N) path. a_ref/b_ref: (tm, 1) f32; x_ref/o_ref: (tb, tm, tn)."""
    x = x_ref[...].astype(jnp.float32)
    a = a_ref[...][None, :, :]                 # (1, tm, 1): bcast over batch & lanes
    hb = 0.5 * b_ref[...][None, :, :]
    y = hb + hb * jnp.tanh(0.5 * a * x)        # == b * sigmoid(a*x); tanh -> EUP
    o_ref[...] = y.astype(o_ref.dtype)


def _ls_kernel_flat(a_ref, b_ref, x_ref, o_ref):
    """Flattened lane-dense path. a_ref/b_ref: (1, tn) f32; x_ref/o_ref: (tb, tn)."""
    x = x_ref[...].astype(jnp.float32)
    a = a_ref[...]                             # (1, tn): bcast over sublanes (rows)
    hb = 0.5 * b_ref[...]
    y = hb + hb * jnp.tanh(0.5 * a * x)
    o_ref[...] = y.astype(o_ref.dtype)


# --------------------------- tiling helpers ---------------------------------


def _round_up(v: int, m: int) -> int:
    return -(-v // m) * m


def _round_down(v: int, m: int) -> int:
    return (v // m) * m


def _tile_for_dim(dim: int, quantum: int, cap: int) -> int:
    """Full dim if it fits (always layout-legal), else the largest multiple of
    `quantum` <= cap (at least one quantum).  Non-divisor tiles are fine: the
    grid uses pl.cdiv and Pallas handles the partial edge blocks."""
    if dim <= quantum or dim <= cap:
        return dim
    return max(quantum, _round_down(min(dim, cap), quantum))


def _tile_budget_bytes() -> int:
    """~8 MiB/buffer on v7x (3.2 TB/s HBM, 64 MiB VMEM), ~4 MiB on v5e/v6e."""
    try:
        vmem_phys = int(getattr(pltpu.get_tpu_info(), "vmem_capacity_bytes", 0) or 0)
    except Exception:
        vmem_phys = 0
    if 0 < vmem_phys <= (64 << 20):            # v7x-class: small VMEM, fast HBM
        return 8 << 20
    return 4 << 20                             # v5e / v6e (128 MiB physical VMEM)


# --------------------------- wrapper -----------------------------------------


def learned_sigmoid(x: jax.Array, a: jax.Array, b: jax.Array,
                    *, target_tile_bytes: int | None = None) -> jax.Array:
    """out[..., m, n] = b[m] / (1 + exp(-a[m] * x[..., m, n]))."""
    assert x.ndim >= 2, "LearnedSigmoid needs >= 2 dims (uses transpose(-1,-2))"
    orig_shape = x.shape
    M, N = orig_shape[-2], orig_shape[-1]
    B = math.prod(orig_shape[:-2]) if x.ndim > 2 else 1

    if target_tile_bytes is None:
        target_tile_bytes = _tile_budget_bytes()

    elem_bytes = jnp.dtype(x.dtype).itemsize
    sub_q = max(8, 32 // max(1, elem_bytes))            # 8 f32 / 16 bf16 / 32 int8
    budget = max(128, target_tile_bytes // elem_bytes)  # elems per x tile
    min_steps = 8                                       # pipeline + v7x megacore
    min_tile_elems = max(128, (256 << 10) // elem_bytes)

    # Learned params broadcast along axis -2 (PyTorch: num_parameters in {1, M}).
    a_m = jnp.broadcast_to(jnp.asarray(a, jnp.float32).reshape(-1), (M,))
    b_m = jnp.broadcast_to(jnp.asarray(b, jnp.float32).reshape(-1), (M,))

    total = B * M * N

    if N >= 128:
        # -------- natural (B, M, N) layout: last dim already lane-dense -----
        x3 = x.reshape(B, M, N)
        a_in = a_m.reshape(M, 1)
        b_in = b_m.reshape(M, 1)

        tn = _tile_for_dim(N, 128, max(128, budget // max(1, min(M, sub_q))))
        tm = _tile_for_dim(M, sub_q, max(1, min(budget // tn, 2048)))
        tb = _tile_for_dim(B, 1, max(1, budget // (tn * tm)))

        # Guarantee enough grid steps for steady-state pipelining / both cores,
        # but never fragment small inputs.
        while (pl.cdiv(B, tb) * pl.cdiv(M, tm) * pl.cdiv(N, tn) < min_steps
               and tb * tm * tn > min_tile_elems):
            if tb > 1:
                tb = max(1, tb // 2)
            elif tm >= 2 * sub_q:
                tm = _round_down(tm // 2, sub_q)
            elif tn >= 2 * 128:
                tn = _round_down(tn // 2, 128)
            else:
                break

        x_tile_bytes = tb * tm * tn * elem_bytes
        prm_tile_bytes = _round_up(tm, 8) * 128 * 4     # (tm,1) f32 pads to 128 lanes
        needed = 4 * x_tile_bytes + 4 * prm_tile_bytes + (2 << 20)
        vmem_limit = int(min(60 << 20, max(32 << 20, needed)))

        grid = (pl.cdiv(B, tb), pl.cdiv(M, tm), pl.cdiv(N, tn))
        out = pl.pallas_call(
            _ls_kernel_rows,
            out_shape=jax.ShapeDtypeStruct((B, M, N), x.dtype),
            grid_spec=pltpu.PrefetchScalarGridSpec(
                num_scalar_prefetch=0,
                grid=grid,
                in_specs=[
                    pl.BlockSpec((tm, 1), lambda bi, mi, ni: (mi, 0)),            # a
                    pl.BlockSpec((tm, 1), lambda bi, mi, ni: (mi, 0)),            # b
                    pl.BlockSpec((tb, tm, tn), lambda bi, mi, ni: (bi, mi, ni)),  # x
                ],
                out_specs=pl.BlockSpec((tb, tm, tn), lambda bi, mi, ni: (bi, mi, ni)),
            ),
            compiler_params=pltpu.CompilerParams(
                dimension_semantics=("parallel", "parallel", "parallel"),
                vmem_limit_bytes=vmem_limit,
            ),
            cost_estimate=pl.CostEstimate(
                flops=3 * total,
                transcendentals=total,
                bytes_accessed=2 * total * elem_bytes + 2 * M * 4,
            ),
        )(a_in, b_in, x3)
        return out.reshape(orig_shape)

    # -------- N < 128: flatten (M, N) -> M*N so output tiles are lane-dense --
    L = M * N
    x2 = x.reshape(B, L)                        # contiguous reshape, free
    a_in = jnp.repeat(a_m, N).reshape(1, L)     # a_flat[m*N + n] = a[m]
    b_in = jnp.repeat(b_m, N).reshape(1, L)

    # Cap the lane tile so each (1, tn) f32 param row (padded to 8 sublanes in
    # VMEM) stays <= ~1/4 of the tile budget.
    param_lane_cap = max(128, target_tile_bytes // (8 * 4 * 4))
    lane_cap = max(128, min(budget // max(1, min(B, sub_q)), param_lane_cap))
    tn = _tile_for_dim(L, 128, lane_cap)
    tb = _tile_for_dim(B, sub_q, max(1, budget // tn))

    while (pl.cdiv(L, tn) * pl.cdiv(B, tb) < min_steps
           and tb * tn > min_tile_elems):
        if tb >= 2 * sub_q:
            tb = _round_down(tb // 2, sub_q)
        elif tn >= 2 * 128:
            tn = _round_down(tn // 2, 128)
        else:
            break

    x_tile_bytes = tb * tn * elem_bytes
    prm_tile_bytes = 8 * _round_up(tn, 128) * 4         # (1, tn) f32 pads to 8 sublanes
    needed = 4 * x_tile_bytes + 4 * prm_tile_bytes + (2 << 20)
    vmem_limit = int(min(60 << 20, max(32 << 20, needed)))

    # Batch is the innermost grid axis: the a/b block index is constant along
    # it, so Pallas skips re-fetching the parameter tiles between those steps.
    grid = (pl.cdiv(L, tn), pl.cdiv(B, tb))
    out = pl.pallas_call(
        _ls_kernel_flat,
        out_shape=jax.ShapeDtypeStruct((B, L), x.dtype),
        grid_spec=pltpu.PrefetchScalarGridSpec(
            num_scalar_prefetch=0,
            grid=grid,
            in_specs=[
                pl.BlockSpec((1, tn), lambda ni, bi: (0, ni)),    # a
                pl.BlockSpec((1, tn), lambda ni, bi: (0, ni)),    # b
                pl.BlockSpec((tb, tn), lambda ni, bi: (bi, ni)),  # x
            ],
            out_specs=pl.BlockSpec((tb, tn), lambda ni, bi: (bi, ni)),
        ),
        compiler_params=pltpu.CompilerParams(
            dimension_semantics=("parallel", "parallel"),
            vmem_limit_bytes=vmem_limit,
        ),
        cost_estimate=pl.CostEstimate(
            flops=3 * total,
            transcendentals=total,
            bytes_accessed=2 * total * elem_bytes + 2 * L * 4,
        ),
    )(a_in, b_in, x2)
    return out.reshape(orig_shape)


if __name__ == "__main__":
    key = jax.random.PRNGKey(0)
    k_x, k_a, k_b = jax.random.split(key, 3)

    # NCHW-style input: batch=2, channels=4, H=16 (axis -2), W=16 (axis -1).
    B, C, M, N = 2, 4, 16, 16
    x = jax.random.normal(k_x, (B, C, M, N), dtype=jnp.float32)

    # num_parameters = M: one (a, b) pair per row of the second-to-last axis.
    # (The PyTorch __init__ fills both Parameters with `b`; they are learned,
    #  so arbitrary values are used here to exercise the broadcast.)
    a = 1.0 + 0.5 * jax.random.normal(k_a, (M,), dtype=jnp.float32)
    b = 1.0 + 0.5 * jax.random.normal(k_b, (M,), dtype=jnp.float32)

    y = learned_sigmoid(x, a, b)
    jax.block_until_ready(y)

    # Reference replicating the PyTorch forward exactly.
    xt = jnp.swapaxes(x, -1, -2)
    ref = jnp.swapaxes(b / (1.0 + jnp.exp(-a * xt)), -1, -2)
    assert y.shape == x.shape and y.dtype == x.dtype
    assert jnp.allclose(y, ref, atol=1e-5, rtol=1e-5)

    # Default-config path: num_parameters = 1.
    y1 = learned_sigmoid(x, jnp.ones((1,), jnp.float32), jnp.ones((1,), jnp.float32))
    jax.block_until_ready(y1)
    ref1 = 1.0 / (1.0 + jnp.exp(-x))
    assert jnp.allclose(y1, ref1, atol=1e-5, rtol=1e-5)

    # Also exercise the natural (B, M, N) path (last dim >= 128) at small scale.
    x3 = jax.random.normal(k_x, (2, 8, 128), dtype=jnp.float32)
    a3 = 1.0 + 0.5 * jax.random.normal(k_a, (8,), dtype=jnp.float32)
    b3 = 1.0 + 0.5 * jax.random.normal(k_b, (8,), dtype=jnp.float32)
    y3 = learned_sigmoid(x3, a3, b3)
    jax.block_until_ready(y3)
    ref3 = jnp.swapaxes(b3 / (1.0 + jnp.exp(-a3 * jnp.swapaxes(x3, -1, -2))), -1, -2)
    assert jnp.allclose(y3, ref3, atol=1e-5, rtol=1e-5)

    print("KERNEL_OK")
</pallas_src>

<mosaic_0001>
module attributes {stable_mosaic.version = 11 : i64} {
  func.func @_ls_kernel_flat(%arg0: i32, %arg1: i32, %arg2: memref<1x256xf32, #tpu.memory_space<vmem>>, %arg3: memref<1x256xf32, #tpu.memory_space<vmem>>, %arg4: memref<8x256xf32, #tpu.memory_space<vmem>>, %arg5: memref<8x256xf32, #tpu.memory_space<vmem>>) attributes {dimension_semantics = [#tpu.dimension_semantics<parallel>, #tpu.dimension_semantics<parallel>], iteration_bounds = array<i64: 1, 1>, scalar_prefetch = 0 : i64, scratch_operands = 0 : i64, tpu.core_type = #tpu.core_type<tc>, window_params = [{transform_indices = @transform_0, window_bounds = array<i64: 1, 256>}, {transform_indices = @transform_1, window_bounds = array<i64: 1, 256>}, {transform_indices = @transform_2, window_bounds = array<i64: 8, 256>}, {transform_indices = @transform_3, window_bounds = array<i64: 8, 256>}]} {
    %c0 = arith.constant 0 : index
    %c0_0 = arith.constant 0 : index
    %0 = vector.load %arg4[%c0, %c0_0] : memref<8x256xf32, #tpu.memory_space<vmem>>, vector<8x256xf32>
    %c0_1 = arith.constant 0 : index
    %c0_2 = arith.constant 0 : index
    %1 = vector.load %arg2[%c0_1, %c0_2] : memref<1x256xf32, #tpu.memory_space<vmem>>, vector<1x256xf32>
    %c0_3 = arith.constant 0 : index
    %c0_4 = arith.constant 0 : index
    %2 = vector.load %arg3[%c0_3, %c0_4] : memref<1x256xf32, #tpu.memory_space<vmem>>, vector<1x256xf32>
    %cst = arith.constant 5.000000e-01 : f32
    %3 = vector.broadcast %cst : f32 to vector<1x256xf32>
    %4 = arith.mulf %3, %2 : vector<1x256xf32>
    %cst_5 = arith.constant 5.000000e-01 : f32
    %5 = vector.broadcast %cst_5 : f32 to vector<1x256xf32>
    %6 = arith.mulf %5, %1 : vector<1x256xf32>
    %7 = vector.broadcast %6 : vector<1x256xf32> to vector<8x256xf32>
    %8 = arith.mulf %7, %0 : vector<8x256xf32>
    %9 = math.tanh %8 : vector<8x256xf32>
    %10 = vector.broadcast %4 : vector<1x256xf32> to vector<8x256xf32>
    %11 = arith.mulf %10, %9 : vector<8x256xf32>
    %12 = vector.broadcast %4 : vector<1x256xf32> to vector<8x256xf32>
    %13 = arith.addf %12, %11 : vector<8x256xf32>
    %c0_6 = arith.constant 0 : index
    %c0_7 = arith.constant 0 : index
    %14 = vector.load %arg5[%c0_6, %c0_7] : memref<8x256xf32, #tpu.memory_space<vmem>>, vector<8x256xf32>
    tpu.vector_store %arg5[%c0_6, %c0_7], %13 {strides = array<i32>} : memref<8x256xf32, #tpu.memory_space<vmem>>, vector<8x256xf32>,
    return
  }
  func.func @transform_0(%arg0: i32, %arg1: i32) -> (i32, i32) {
    %c0_i32 = arith.constant 0 : i32
    %c0_i32_0 = arith.constant 0 : i32
    return %c0_i32, %arg0 : i32, i32
  }
  func.func @transform_1(%arg0: i32, %arg1: i32) -> (i32, i32) {
    %c0_i32 = arith.constant 0 : i32
    %c0_i32_0 = arith.constant 0 : i32
    return %c0_i32, %arg0 : i32, i32
  }
  func.func @transform_2(%arg0: i32, %arg1: i32) -> (i32, i32) {
    %c0_i32 = arith.constant 0 : i32
    return %arg1, %arg0 : i32, i32
  }
  func.func @transform_3(%arg0: i32, %arg1: i32) -> (i32, i32) {
    %c0_i32 = arith.constant 0 : i32
    return %arg1, %arg0 : i32, i32
  }
}

</mosaic_0001>

<bundles_post_ra>
// kernel: tpu_custom_call.1
= control target key start
LH: loop header
LB: loop body
LE: loop exit
PB: predicated region body
PF: predicated region fallthrough
CT: control target
= control target key end

     0   :  { %8 = vsyncpa [#allocation3], 0  ;;  %s234_s0 = inlined_call_operand.hbm [shape: f32[1,256], index: 0, kind: input, shape index: {}]   ;;  %s235_s1 = inlined_call_operand.vmem [shape: f32[1,256], index: 1, kind: input, shape index: {}]   ;;  %s236_s2 = inlined_call_operand.hbm [shape: f32[8,256], index: 2, kind: input, shape index: {}]   ;;  %s237_s3 = inlined_call_operand.hbm [shape: f32[8,256], index: 3, kind: output, shape index: {}]  }
   0x1   :  { %9 = vsyncpa [#allocation6], 0 }
   0x2   :  { %10 = vsyncpa [#allocation4], 0  ;;  %s172_s12 = smov [#allocation2]   ;;  %s173_s14 = smov [#allocation5]  }
   0x3   :  { %s17_s13 = sshll.u32 %s172_s12, 4  ;;  %s29_s15 = sshll.u32 %s173_s14, 4  ;;  %s18_s13 = int_to_ptr.vmem [resolvable:$true] %s17_s13  ;;  %s30_s15 = int_to_ptr.vmem [resolvable:$true] %s29_s15 }
   0x4   :  { %s100_s18 = scalar_lea.hbm %s234_s0, 32 }
   0x5   :  { %p101_p0 = scmp.ne.s32.totalorder %s234_s0, %s100_s18  ;;  %p104_p1 = scmp.lt.u32.totalorder %s100_s18, %s234_s0 }
   0x7   :  { %p106_p2 = pnand %p104_p1, %p101_p0 }
   0x9   :  { %109 = shalt.err (!%p106_p2)
}
   0xa   :  { %s110_s23 = scalar_lea.vmem %s18_s13, 32  ;;  %p115_p4 = scmp.lt.s32.totalorder %s18_s13, %s18_s13 }
   0xb   :  { %p111_p3 = scmp.ne.s32.totalorder %s18_s13, %s110_s23  ;;  %p116_p5 = scmp.lt.s32.totalorder %s110_s23, %s110_s23 }
   0xd   :  { %p117_p6 = por %p116_p5, %p115_p4 }
   0xf   :  { %p118_p7 = pnand %p117_p6, %p111_p3 }
  0x11   :  { %121 = shalt.err (!%p118_p7)
}
  0x12   :  { %20 = dma.hbm_to_vmem [thread:$0]  %s234_s0, 32, %s18_s13, [#allocation3]  }
  0x13   :  { %s122_s28 = scalar_lea.hbm %s236_s2, 256 }
  0x14   :  { %p123_p8 = scmp.ne.s32.totalorder %s236_s2, %s122_s28  ;;  %p126_p9 = scmp.lt.u32.totalorder %s122_s28, %s236_s2 }
  0x16   :  { %p128_p10 = pnand %p126_p9, %p123_p8 }
  0x18   :  { %131 = shalt.err (!%p128_p10)
}
  0x19   :  { %s132_s6 = scalar_lea.vmem %s30_s15, 256  ;;  %p137_p12 = scmp.lt.s32.totalorder %s30_s15, %s30_s15 }
  0x1a   :  { %p133_p11 = scmp.ne.s32.totalorder %s30_s15, %s132_s6  ;;  %p138_p13 = scmp.lt.s32.totalorder %s132_s6, %s132_s6 }
  0x1c   :  { %p139_p0 = por %p138_p13, %p137_p12 }
  0x1e   :  { %p140_p1 = pnand %p139_p0, %p133_p11 }
  0x20   :  { %143 = shalt.err (!%p140_p1)
}
  0x21   :  { %32 = dma.hbm_to_vmem [thread:$0]  %s236_s2, 256, %s30_s15, [#allocation6]  }
  0x22   :  { %166 = dma.done.wait [#allocation3], 32  }
  0x23   :  { %167 = vsyncadd [#allocation3], 4294967264 }
  0x24   :  { %168 = dma.done.wait [#allocation6], 256  }
  0x25   :  { %169 = vsyncadd [#allocation6], 4294967040  ;;  %v46_v0 = vlaneseq  ;;  %v41_v4 = vld [vmem:[#allocation2] sm:$0x3]  ;;  %v39_v6 = vld [vmem:[#allocation5] sm:$0xff]  ;;  %s174_s2 = smov [#allocation7]  }
  0x26   :  { %v44_v5 = vmul.f32 0.5, %v41_v4  ;;  %v40_v7 = vld [vmem:[#allocation5 + $0x8] sm:$0xff]  ;;  %v42_v12 = vld [vmem:[%s235_s1] sm:$0x3]  ;;  %s83_s10 = sshll.u32 %s174_s2, 4  ;;  %s84_s10 = int_to_ptr.vmem [resolvable:$true] %s83_s10 }
  0x27   :  { %v47_v1 = vshrl.u32 %v46_v0, 7  ;;  %v43_v13 = vmul.f32 0.5, %v42_v12  ;;  %s144_s11 = scalar_lea.vmem %s84_s10, 256  ;;  %p149_p3 = scmp.lt.s32.totalorder %s84_s10, %s84_s10 }
  0x28   :  { %p145_p2 = scmp.ne.s32.totalorder %s84_s10, %s144_s11  ;;  %p150_p4 = scmp.lt.s32.totalorder %s144_s11, %s144_s11 }
  0x29   :  { %v48_v2 = vsub.s32 0, %v47_v1  ;;  %v52_v3 = vsub.s32 1, %v47_v1 }
  0x2a   :  { %p151_p5 = por %p150_p4, %p149_p3 }
  0x2b   :  { %v49_v8 = vrot.slane %v44_v5, %v48_v2  ;;  %v53_v9 = vrot.slane %v44_v5, %v52_v3  ;;  %v64_v14 = vrot.slane %v43_v13, %v48_v2  ;;  %v68_v15 = vrot.slane %v43_v13, %v52_v3 }
  0x2c   :  { %p152_p6 = pnand %p151_p5, %p145_p2 }
  0x2d   :  { %v56_v10 = vmul.f32 %v49_v8, %v39_v6  ;;  %v57_v11 = vmul.f32 %v53_v9, %v40_v7 }
  0x2f   :  { %96 = vtanh.f32 %v56_v10 }
  0x30   :  { %98 = vtanh.f32 %v57_v11 }
  0x39   :  { %v97_v16 = vpop.eup %96 }
  0x3a   :  { %v99_v17 = vpop.eup %98  ;;  %v71_v18 = vmul.f32 %v97_v16, %v64_v14 }
  0x3b   :  { %v72_v19 = vmul.f32 %v99_v17, %v68_v15 }
  0x3c   :  { %v73_v20 = vadd.f32 %v71_v18, %v64_v14 }
  0x3d   :  { %v74_v21 = vadd.f32 %v72_v19, %v68_v15 }
  0x3e   :  { %75 = vst [vmem:[#allocation7] sm:$0xff] %v73_v20 }
  0x3f   :  { %76 = vst [vmem:[#allocation7 + $0x8] sm:$0xff] %v74_v21 }
  0x40   :  { %155 = shalt.err (!%p152_p6)
}
  0x41   :  { %s156_s13 = scalar_lea.hbm %s237_s3, 256 }
  0x42   :  { %p157_p7 = scmp.ne.s32.totalorder %s237_s3, %s156_s13  ;;  %p160_p8 = scmp.lt.u32.totalorder %s156_s13, %s237_s3 }
  0x44   :  { %p162_p9 = pnand %p160_p8, %p157_p7 }
  0x46   :  { %165 = shalt.err (!%p162_p9)
}
  0x47   :  { %86 = dma.vmem_to_hbm [thread:$0]  %s84_s10, 256, %s237_s3, [#allocation4]  }
  0x48   :  { %170 = dma.done.wait [#allocation4], 256  }
  0x49   :  { %171 = vsyncadd [#allocation4], 4294967040 }
  0x4a   :  { %90 = vsyncpa [#allocation3], 1 }
  0x4b   :  { %91 = vsyncpa [#allocation6], 1 }
  0x4c   :  { %92 = vsyncpa [#allocation4], 1 }

</bundles_post_ra>
